<compile_context>
chip_gen: v6e
topology: v6e:2x2x1
jax: 0.10.0
libtpu: 0.0.40
codegen_flags: <defaults>
</compile_context>

<pallas_src>
import jax
import jax.numpy as jnp
from jax.experimental import pallas as pl
from jax.experimental.pallas import tpu as pltpu

LANE = 128
# Below this many elements the fixed pallas_call launch/prologue dominates.
_MIN_PALLAS_ELEMS = 64 * 1024
# Keep per-block bytes on the HBM-roofline plateau; 2 MiB * (in+out) * 2 buffers
# = 8 MiB, comfortably inside scoped VMEM on v5e/v6e/v7x.
_TARGET_BLOCK_BYTES = 2 * 1024 * 1024


def _hardsigmoid_kernel(x_ref, o_ref):
    x = x_ref[...]
    y = jnp.clip(x, -1.0, 1.0)      # nn.Hardtanh() default range [-1, 1]
    o_ref[...] = (y + 1.0) * 0.5    # weak-typed scalars keep the input dtype


def _hardsigmoid_jnp(x):
    return (jnp.clip(x, -1.0, 1.0) + 1.0) * 0.5


def _round_up(v: int, m: int) -> int:
    return ((v + m - 1) // m) * m


def _tile_rows(rows: int, itemsize: int) -> int:
    """Pick the block row-extent.

    - Cap block bytes at ~2 MiB, dtype-scaled (4096 rows f32, 8192 bf16, 16384 int8).
    - Otherwise aim for ~8+ grid steps so DMAs pipeline and both v7x TCs get work.
    - Multiple of 32 rows keeps the block legal for f32/bf16/int8/fp8 sublane
      packing even when the final block is cdiv-masked.
    """
    max_rows = max(32, (_TARGET_BLOCK_BYTES // (LANE * itemsize)) // 32 * 32)
    tr = min(max_rows, _round_up(pl.cdiv(rows, 8), 32))
    # Prefer an even number of grid steps (avoids a 1-step load imbalance across
    # v7x's two TensorCores); best-effort only.
    steps = pl.cdiv(rows, tr)
    if steps > 2 and steps % 2 == 1:
        tr_alt = min(max_rows, _round_up(pl.cdiv(rows, steps + 1), 32))
        if tr_alt >= 32 and pl.cdiv(rows, tr_alt) % 2 == 0:
            tr = tr_alt
    return tr


def _hardsigmoid_2d(x2d: jax.Array) -> jax.Array:
    rows, _ = x2d.shape
    tr = _tile_rows(rows, jnp.dtype(x2d.dtype).itemsize)
    grid = (pl.cdiv(rows, tr),)   # cdiv grid: Pallas masks the partial final block
    return pl.pallas_call(
        _hardsigmoid_kernel,
        out_shape=jax.ShapeDtypeStruct((rows, LANE), x2d.dtype),
        grid_spec=pltpu.PrefetchScalarGridSpec(
            num_scalar_prefetch=0,
            grid=grid,
            in_specs=[pl.BlockSpec((tr, LANE), lambda i: (i, 0))],
            out_specs=pl.BlockSpec((tr, LANE), lambda i: (i, 0)),
        ),
        compiler_params=pltpu.CompilerParams(
            # Every grid step is independent -> shards across both TensorCores
            # on v7x, neutral on v5e/v6e.
            dimension_semantics=("parallel",),
            # Explicit scoped-VMEM headroom (v5e default is only 16 MiB);
            # 32 MiB is safe on all of v5e/v6e/v7x (v7x has 64 MiB physical).
            vmem_limit_bytes=32 * 1024 * 1024,
        ),
    )(x2d)


def hardsigmoid(x: jax.Array) -> jax.Array:
    """Elementwise (hardtanh(x)+1)/2 over an arbitrarily-shaped array (NCHW, etc.)."""
    orig_shape = x.shape
    # Guard non-float inputs: clip/scale semantics are float (PyTorch Hardtanh
    # is float-only as well); compute and return in float32 for those.
    if not jnp.issubdtype(x.dtype, jnp.floating):
        x = x.astype(jnp.float32)
    n = x.size
    if n == 0:
        return jnp.reshape(x, orig_shape)

    # Tiny tensors: skip the custom call entirely; XLA's fused elementwise wins.
    if n < _MIN_PALLAS_ELEMS:
        return jnp.reshape(_hardsigmoid_jnp(jnp.ravel(x)), orig_shape)

    x_flat = jnp.ravel(x)
    n_main = (n // LANE) * LANE     # lane-aligned prefix (== n for typical NCHW sizes)
    rows = n_main // LANE

    out_main = _hardsigmoid_2d(x_flat[:n_main].reshape(rows, LANE)).reshape(-1)

    if n_main == n:                 # common case: no pad, no slice, no concat
        return out_main.reshape(orig_shape)

    # Rare <=127-element tail: handle with plain jnp instead of materializing a
    # padded copy of the whole tensor (old path paid a full extra HBM
    # read+write for both the pad and the slice).
    out_tail = _hardsigmoid_jnp(x_flat[n_main:])
    return jnp.concatenate([out_main, out_tail]).reshape(orig_shape)


if __name__ == "__main__":
    key = jax.random.PRNGKey(0)
    k1, k2, k3 = jax.random.split(key, 3)

    def ref_fn(v):
        return (jnp.clip(v, -1.0, 1.0) + 1.0) / 2.0

    # 1) Small NCHW demo consistent with the module (2*4*16*16 = 2048 elems:
    #    exercises the tiny-input jnp bypass).
    x_small = jax.random.normal(k1, (2, 4, 16, 16), dtype=jnp.float32) * 2.0
    out_small = hardsigmoid(x_small)
    jax.block_until_ready(out_small)
    assert out_small.shape == x_small.shape and out_small.dtype == x_small.dtype
    assert jnp.max(jnp.abs(out_small - ref_fn(x_small))) < 1e-6

    # 2) Larger NCHW tensor that exercises the Pallas kernel (f32, 8 grid steps).
    x_big = jax.random.normal(k2, (8, 64, 32, 32), dtype=jnp.float32) * 2.0
    out_big = hardsigmoid(x_big)
    jax.block_until_ready(out_big)
    assert out_big.shape == x_big.shape and out_big.dtype == x_big.dtype
    assert jnp.max(jnp.abs(out_big - ref_fn(x_big))) < 1e-6

    # 3) Same tensor in bf16 (checks dtype-scaled tile rows + dtype preservation).
    x_bf16 = x_big.astype(jnp.bfloat16)
    out_bf16 = hardsigmoid(x_bf16)
    jax.block_until_ready(out_bf16)
    assert out_bf16.dtype == jnp.bfloat16
    assert jnp.max(jnp.abs(out_bf16.astype(jnp.float32)
                           - ref_fn(x_bf16).astype(jnp.float32))) < 1e-2

    # 4) Awkward (non-multiple-of-128) size: aligned-prefix kernel + jnp tail.
    x_tail = jax.random.normal(k3, (64 * 1024 + 37,), dtype=jnp.float32) * 2.0
    out_tail = hardsigmoid(x_tail)
    jax.block_until_ready(out_tail)
    assert out_tail.shape == x_tail.shape and out_tail.dtype == x_tail.dtype
    assert jnp.max(jnp.abs(out_tail - ref_fn(x_tail))) < 1e-6

    print("KERNEL_OK")
</pallas_src>

<mosaic_0001>
module attributes {stable_mosaic.version = 11 : i64} {
  func.func @_hardsigmoid_kernel(%arg0: i32, %arg1: memref<512x128xf32, #tpu.memory_space<vmem>>, %arg2: memref<512x128xf32, #tpu.memory_space<vmem>>) attributes {dimension_semantics = [#tpu.dimension_semantics<parallel>], iteration_bounds = array<i64: 8>, scalar_prefetch = 0 : i64, scratch_operands = 0 : i64, tpu.core_type = #tpu.core_type<tc>, window_params = [{transform_indices = @transform_0, window_bounds = array<i64: 512, 128>}, {transform_indices = @transform_1, window_bounds = array<i64: 512, 128>}]} {
    %c0 = arith.constant 0 : index
    %c0_0 = arith.constant 0 : index
    %0 = vector.load %arg1[%c0, %c0_0] : memref<512x128xf32, #tpu.memory_space<vmem>>, vector<512x128xf32>
    %cst = arith.constant -1.000000e+00 : f32
    %cst_1 = arith.constant 1.000000e+00 : f32
    %1 = vector.broadcast %cst : f32 to vector<512x128xf32>
    %2 = arith.maximumf %1, %0 : vector<512x128xf32>
    %3 = vector.broadcast %cst_1 : f32 to vector<512x128xf32>
    %4 = arith.minimumf %3, %2 : vector<512x128xf32>
    %cst_2 = arith.constant 1.000000e+00 : f32
    %5 = vector.broadcast %cst_2 : f32 to vector<512x128xf32>
    %6 = arith.addf %4, %5 : vector<512x128xf32>
    %cst_3 = arith.constant 5.000000e-01 : f32
    %7 = vector.broadcast %cst_3 : f32 to vector<512x128xf32>
    %8 = arith.mulf %6, %7 : vector<512x128xf32>
    %c0_4 = arith.constant 0 : index
    %c0_5 = arith.constant 0 : index
    %9 = vector.load %arg2[%c0_4, %c0_5] : memref<512x128xf32, #tpu.memory_space<vmem>>, vector<512x128xf32>
    tpu.vector_store %arg2[%c0_4, %c0_5], %8 {strides = array<i32>} : memref<512x128xf32, #tpu.memory_space<vmem>>, vector<512x128xf32>,
    return
  }
  func.func @transform_0(%arg0: i32) -> (i32, i32) {
    %c0_i32 = arith.constant 0 : i32
    %c0_i32_0 = arith.constant 0 : i32
    return %arg0, %c0_i32 : i32, i32
  }
  func.func @transform_1(%arg0: i32) -> (i32, i32) {
    %c0_i32 = arith.constant 0 : i32
    %c0_i32_0 = arith.constant 0 : i32
    return %arg0, %c0_i32 : i32, i32
  }
}

</mosaic_0001>

<bundles_post_ra>
// kernel: tpu_custom_call.1
= control target key start
LH: loop header
LB: loop body
LE: loop exit
PB: predicated region body
PF: predicated region fallthrough
CT: control target
= control target key end

     0   :  { %6 = vsyncpa [#allocation3], 0  ;;  %s1137_s0 = inlined_call_operand.hbm [shape: f32[4096,128], index: 0, kind: input, shape index: {}]   ;;  %s1138_s1 = inlined_call_operand.hbm [shape: f32[4096,128], index: 1, kind: output, shape index: {}]  }
   0x1   :  { %8 = vsyncpa [#allocation3 + $0x1], 0 }
   0x2   :  { %9 = vsyncpa [#allocation4], 0 }
   0x3   :  { %11 = vsyncpa [#allocation4 + $0x1], 0  ;;  %s848_s6 = smov 0   ;;  %s850_s7 = smov 0  }
   0x4   :  { %s852_s8 = smov 0   ;;  %s854_s9 = smov 0  }
   0x5 LB: > { %s869_s10 = sadd.s32 4294967295, %s830_s9   ;;  %s608_s11 = sadd.s32 4294967294, %s830_s9   ;;  %s830_s9 = sphi %s854_s9, %s1152_s9   ;;  %s826_s8 = sphi %s852_s8, %s1151_s8   ;;  %s822_s7 = sphi %s850_s7, %s1150_s7   ;;  %s818_s6 = sphi %s848_s6, %s1149_s6  }
   0x6   : > { %s873_s12 = sadd.s32 1, %s830_s9   ;;  %s24_s13 = sadd.s32 1, %s826_s8 }
   0x7   : > { %s21_s14 = ssub.s32 %s830_s9, %s873_s12  ;;  %p31_p0 = scmp.ne.s32.totalorder %s826_s8, %s822_s7 }
   0x8   : > { %p22_p1 = scmp.eq.s32.totalorder %s21_s14, 0  ;;  %p32_p2 = scmp.eq.s32.totalorder %s830_s9, 0 }
   0x9   : > { %p37_p3 = scmp.ne.s32.totalorder %s822_s7, %s818_s6  ;;  %p38_p4 = scmp.eq.s32.totalorder %s869_s10, 0 }
   0xa   : > { %s885_s15 = scalar_select %p22_p1, %s826_s8, %s24_s13  }
   0xb   : > { %p887_p5 = por %p32_p2, %p31_p0  ;;  %p891_p6 = por %p38_p4, %p37_p3 }
   0xc   : > { %p61_p7 = scmp.eq.s32.totalorder %s869_s10, 7  ;;  %p67_p8 = scmp.eq.s32.totalorder %s608_s11, 7 }
   0xd   : > { %s1142_s17 = scalar_select %p891_p6, 1, 0 }
   0xe   : > { %p700_p9 = scmp.lt.s32.totalorder %s830_s9, 8  ;;  %p897_p10 = por %p61_p7, %p31_p0 }
   0xf   : > { %p901_p11 = por %p67_p8, %p37_p3  ;;  %s87_s20 = sand.u32 1, %s826_s8  }
  0x10   : > { %s1143_s18 = scalar_select %p897_p10, 1, 0 }
  0x11   : > { %s1144_s19 = scalar_select %p901_p11, 1, 0 }
  0x12   : > { %s686_s21 = sshll.u32 %s830_s9, 13  ;;  %s611_s22 = sshll.u32 %s87_s20, 9 }
  0x13   : > { %s910_s25 = scalar_lea.hbm %s1137_s0, %s686_s21  ;;  %s91_s26 = scalar_lea.vmem [#allocation2], %s611_s22 }
  0x14   : > { %s98_s27 = sshll.u32 %s91_s26, 4  ;;  %p914_p12 = pnand %p700_p9, %p887_p5  ;;  %s918_s27 = int_to_ptr.vmem [resolvable:$true] %s98_s27 }
  0x15   : > { %s920_s29 = scalar_lea.sflag [#allocation3], %s87_s20  ;;  %s738_s30 = scalar_lea.hbm %s910_s25, 8192 }
  0x16   : > { %p739_p13 = scmp.ne.s32.totalorder %s910_s25, %s738_s30  ;;  %p740_p0 = pneg %p914_p12 }
  0x17   : > { %s743_s4 = scalar_lea.hbm %s1137_s0, 65536  ;;  %p744_p3 = scmp.lt.s32.totalorder %s910_s25, %s1137_s0 }
  0x18   : > { %p741_p1 = pnand %p740_p0, %p739_p13  ;;  %p745_p4 = scmp.lt.s32.totalorder %s743_s4, %s738_s30 }
  0x1a   : > { %p742_p2 = pneg %p741_p1  ;;  %p746_p5 = por %p745_p4, %p744_p3 }
  0x1c   : > { %p747_p7 = pnand %p746_p5, %p742_p2 }
  0x1e   : > { %750 = shalt.err (!%p747_p7)
}
  0x1f   : > { %s751_s13 = scalar_lea.vmem %s918_s27, 8192  ;;  %s832_s14 = smov [#allocation2]  }
  0x20   : > { %p752_p8 = scmp.ne.s32.totalorder %s918_s27, %s751_s13  ;;  %s756_s16 = sshll.u32 %s832_s14, 4  ;;  %s757_s16 = int_to_ptr.vmem [resolvable:$false] %s756_s16 }
  0x21   : > { %s758_s20 = scalar_lea.vmem %s757_s16, 16384  ;;  %p759_p1 = scmp.lt.s32.totalorder %s918_s27, %s757_s16 }
  0x22   : > { %p754_p9 = pnand %p752_p8, %p740_p0  ;;  %p760_p11 = scmp.lt.s32.totalorder %s758_s20, %s751_s13 }
  0x24   : > { %p755_p13 = pneg %p754_p9  ;;  %p761_p10 = por %p760_p11, %p759_p1 }
  0x26   : > { %p762_p6 = pnand %p761_p10, %p755_p13 }
  0x28   : > { %765 = shalt.err (!%p762_p6)
}
  0x29   : > { %s833_s21 = smov 128   ;;  %s834_s22 = smov 8  }
  0x2a   : > { %695 = dma.hbm_to_vmem [thread:$0]  (!%p914_p12), %s910_s25, 8192, %s918_s27, %s920_s29, %s833_s21, %s833_s21, %s834_s22  }
  0x2b   : > { %p614_p0 = scmp.ge.s32.totalorder %s830_s9, 1  ;;  %p106_p2 = scmp.lt.s32.totalorder %s830_s9, 9 }
  0x2d   : > { %p107_p3 = pnand %p614_p0, %p106_p2 }
  0x2e   : > { %s944_s23 = sand.u32 (!%p107_p3), 1, %s822_s7   ;;  %p1146_p6 = scmp.ne.s32.totalorder (!%p107_p3), %s1142_s17, 0 }
  0x2f   : > { %110 = sbr.rel (%p107_p3) target bundleno = 128 (0x80), region = 24  ;;  %s615_s24 = sshll.u32 (!%p107_p3), %s944_s23, 9 }
  0x30   : > { %s113_s26 = scalar_lea.sflag (!%p107_p3), [#allocation3], %s944_s23  ;;  %s950_s30 = scalar_lea.vmem (!%p107_p3), [#allocation2], %s615_s24 }
  0x34   : > { %809 = dma.done.wait (%p1146_p6), %s113_s26, 8192  }
  0x35   : > { %811 = vsyncadd (%p1146_p6), %s113_s26, 4294959104  ;;  %v137_v0 = vld [vmem:[%s950_s30] sm:$0xff]  ;;  %v138_v1 = vld [vmem:[%s950_s30 + $0x8] sm:$0xff]  ;;  %s973_s17 = scalar_lea.vmem [#allocation5], %s615_s24  ;;  %s687_s25 = sshll.u32 %s869_s10, 13 }
  0x36   : > { %v139_v2 = vld [vmem:[%s950_s30 + $0x10] sm:$0xff]  ;;  %v617_v3 = vclamps-f32 %v137_v0, 1.0  ;;  %v618_v4 = vclamps-f32 %v138_v1, 1.0  ;;  %v140_v6 = vld [vmem:[%s950_s30 + $0x18] sm:$0xff]  ;;  %v141_v7 = vld [vmem:[%s950_s30 + $0x20] sm:$0xff]  ;;  %s535_s27 = sshll.u32 %s973_s17, 4  ;;  %s1088_s29 = scalar_lea.hbm %s1138_s1, %s687_s25  ;;  %s1090_s27 = int_to_ptr.vmem [resolvable:$true] %s535_s27 }
  0x37   : > { %v619_v5 = vclamps-f32 %v139_v2, 1.0  ;;  %v142_v8 = vld [vmem:[%s950_s30 + $0x28] sm:$0xff]  ;;  %v620_v9 = vclamps-f32 %v140_v6, 1.0  ;;  %v621_v10 = vclamps-f32 %v141_v7, 1.0  ;;  %v143_v12 = vld [vmem:[%s950_s30 + $0x30] sm:$0xff]  ;;  %v144_v13 = vld [vmem:[%s950_s30 + $0x38] sm:$0xff] }
  0x38   : > { %v622_v11 = vclamps-f32 %v142_v8, 1.0  ;;  %v329_v14 = vadd.f32 1.0, %v617_v3  ;;  %v330_v15 = vadd.f32 1.0, %v618_v4  ;;  %v623_v17 = vclamps-f32 %v143_v12, 1.0  ;;  %v145_v18 = vld [vmem:[%s950_s30 + $0x40] sm:$0xff]  ;;  %v146_v19 = vld [vmem:[%s950_s30 + $0x48] sm:$0xff] }
  0x39   : > { %v331_v16 = vadd.f32 1.0, %v619_v5  ;;  %v332_v20 = vadd.f32 1.0, %v620_v9  ;;  %v333_v21 = vadd.f32 1.0, %v621_v10  ;;  %v624_v23 = vclamps-f32 %v144_v13, 1.0  ;;  %v147_v24 = vld [vmem:[%s950_s30 + $0x50] sm:$0xff]  ;;  %v148_v25 = vld [vmem:[%s950_s30 + $0x58] sm:$0xff] }
  0x3a   : > { %v334_v22 = vadd.f32 1.0, %v622_v11  ;;  %v393_v26 = vmul.f32 0.5, %v329_v14  ;;  %v394_v27 = vmul.f32 0.5, %v330_v15  ;;  %v335_v29 = vadd.f32 1.0, %v623_v17  ;;  %v149_v30 = vld [vmem:[%s950_s30 + $0x60] sm:$0xff]  ;;  %v150_v31 = vld [vmem:[%s950_s30 + $0x68] sm:$0xff] }
  0x3b   : > { %v395_v28 = vmul.f32 0.5, %v331_v16  ;;  %v396_v32 = vmul.f32 0.5, %v332_v20  ;;  %v397_v33 = vmul.f32 0.5, %v333_v21  ;;  %v336_v35 = vadd.f32 1.0, %v624_v23  ;;  %v151_v36 = vld [vmem:[%s950_s30 + $0x70] sm:$0xff]  ;;  %v152_v41 = vld [vmem:[%s950_s30 + $0x78] sm:$0xff] }
  0x3c   : > { %v398_v34 = vmul.f32 0.5, %v334_v22  ;;  %457 = vst [vmem:[%s973_s17] sm:$0xff] %v393_v26  ;;  %458 = vst [vmem:[%s973_s17 + $0x8] sm:$0xff] %v394_v27  ;;  %v399_v37 = vmul.f32 0.5, %v335_v29  ;;  %v625_v38 = vclamps-f32 %v145_v18, 1.0  ;;  %v626_v39 = vclamps-f32 %v146_v19, 1.0  ;;  %v153_v50 = vld [vmem:[%s950_s30 + $0x80] sm:$0xff] }
  0x3d   : > { %459 = vst [vmem:[%s973_s17 + $0x10] sm:$0xff] %v395_v28  ;;  %v627_v40 = vclamps-f32 %v147_v24, 1.0  ;;  %460 = vst [vmem:[%s973_s17 + $0x18] sm:$0xff] %v396_v32  ;;  %v400_v42 = vmul.f32 0.5, %v336_v35  ;;  %v628_v43 = vclamps-f32 %v148_v25, 1.0  ;;  %v629_v44 = vclamps-f32 %v149_v30, 1.0 }
  0x3e   : > { %461 = vst [vmem:[%s973_s17 + $0x20] sm:$0xff] %v397_v33  ;;  %462 = vst [vmem:[%s973_s17 + $0x28] sm:$0xff] %v398_v34  ;;  %v630_v45 = vclamps-f32 %v150_v31, 1.0  ;;  %v337_v46 = vadd.f32 1.0, %v625_v38  ;;  %v338_v47 = vadd.f32 1.0, %v626_v39  ;;  %v631_v49 = vclamps-f32 %v151_v36, 1.0 }
  0x3f   : > { %463 = vst [vmem:[%s973_s17 + $0x30] sm:$0xff] %v399_v37  ;;  %v339_v48 = vadd.f32 1.0, %v627_v40  ;;  %v154_v51 = vld [vmem:[%s950_s30 + $0x88] sm:$0xff]  ;;  %464 = vst [vmem:[%s973_s17 + $0x38] sm:$0xff] %v400_v42  ;;  %v340_v52 = vadd.f32 1.0, %v628_v43  ;;  %v341_v53 = vadd.f32 1.0, %v629_v44 }
  0x40   : > { %v342_v54 = vadd.f32 1.0, %v630_v45  ;;  %v632_v55 = vclamps-f32 %v152_v41, 1.0  ;;  %v155_v56 = vld [vmem:[%s950_s30 + $0x90] sm:$0xff]  ;;  %v156_v57 = vld [vmem:[%s950_s30 + $0x98] sm:$0xff]  ;;  %v401_v58 = vmul.f32 0.5, %v337_v46  ;;  %v402_v59 = vmul.f32 0.5, %v338_v47 }
  0x41   : > { %v403_v60 = vmul.f32 0.5, %v339_v48  ;;  %v343_v61 = vadd.f32 1.0, %v631_v49  ;;  %v157_v62 = vld [vmem:[%s950_s30 + $0xa0] sm:$0xff]  ;;  %v158_v63 = vld [vmem:[%s950_s30 + $0xa8] sm:$0xff]  ;;  %v404_v0 = vmul.f32 0.5, %v340_v52  ;;  %v405_v1 = vmul.f32 0.5, %v341_v53 }
  0x42   : > { %v406_v2 = vmul.f32 0.5, %v342_v54  ;;  %v344_v3 = vadd.f32 1.0, %v632_v55  ;;  %v159_v4 = vld [vmem:[%s950_s30 + $0xb0] sm:$0xff]  ;;  %465 = vst [vmem:[%s973_s17 + $0x40] sm:$0xff] %v401_v58  ;;  %466 = vst [vmem:[%s973_s17 + $0x48] sm:$0xff] %v402_v59  ;;  %v633_v6 = vclamps-f32 %v153_v50, 1.0 }
  0x43   : > { %467 = vst [vmem:[%s973_s17 + $0x50] sm:$0xff] %v403_v60  ;;  %v407_v5 = vmul.f32 0.5, %v343_v61  ;;  %v634_v7 = vclamps-f32 %v154_v51, 1.0  ;;  %v635_v8 = vclamps-f32 %v155_v56, 1.0  ;;  %v160_v9 = vld [vmem:[%s950_s30 + $0xb8] sm:$0xff]  ;;  %468 = vst [vmem:[%s973_s17 + $0x58] sm:$0xff] %v404_v0 }
  0x44   : > { %469 = vst [vmem:[%s973_s17 + $0x60] sm:$0xff] %v405_v1  ;;  %470 = vst [vmem:[%s973_s17 + $0x68] sm:$0xff] %v406_v2  ;;  %v408_v10 = vmul.f32 0.5, %v344_v3  ;;  %v636_v11 = vclamps-f32 %v156_v57, 1.0  ;;  %v637_v12 = vclamps-f32 %v157_v62, 1.0  ;;  %v638_v13 = vclamps-f32 %v158_v63, 1.0 }
  0x45   : > { %471 = vst [vmem:[%s973_s17 + $0x70] sm:$0xff] %v407_v5  ;;  %v345_v14 = vadd.f32 1.0, %v633_v6  ;;  %v346_v15 = vadd.f32 1.0, %v634_v7  ;;  %v347_v16 = vadd.f32 1.0, %v635_v8  ;;  %v639_v17 = vclamps-f32 %v159_v4, 1.0  ;;  %v161_v18 = vld [vmem:[%s950_s30 + $0xc0] sm:$0xff] }
  0x46   : > { %v162_v19 = vld [vmem:[%s950_s30 + $0xc8] sm:$0xff]  ;;  %472 = vst [vmem:[%s973_s17 + $0x78] sm:$0xff] %v408_v10  ;;  %v348_v20 = vadd.f32 1.0, %v636_v11  ;;  %v349_v21 = vadd.f32 1.0, %v637_v12  ;;  %v350_v22 = vadd.f32 1.0, %v638_v13  ;;  %v640_v23 = vclamps-f32 %v160_v9, 1.0 }
  0x47   : > { %v163_v24 = vld [vmem:[%s950_s30 + $0xd0] sm:$0xff]  ;;  %v164_v25 = vld [vmem:[%s950_s30 + $0xd8] sm:$0xff]  ;;  %v409_v26 = vmul.f32 0.5, %v345_v14  ;;  %v410_v27 = vmul.f32 0.5, %v346_v15  ;;  %v411_v28 = vmul.f32 0.5, %v347_v16  ;;  %v351_v29 = vadd.f32 1.0, %v639_v17 }
  0x48   : > { %v165_v30 = vld [vmem:[%s950_s30 + $0xe0] sm:$0xff]  ;;  %v166_v31 = vld [vmem:[%s950_s30 + $0xe8] sm:$0xff]  ;;  %v412_v32 = vmul.f32 0.5, %v348_v20  ;;  %v413_v33 = vmul.f32 0.5, %v349_v21  ;;  %v414_v34 = vmul.f32 0.5, %v350_v22  ;;  %v352_v35 = vadd.f32 1.0, %v640_v23 }
  0x49   : > { %v167_v36 = vld [vmem:[%s950_s30 + $0xf0] sm:$0xff]  ;;  %473 = vst [vmem:[%s973_s17 + $0x80] sm:$0xff] %v409_v26  ;;  %474 = vst [vmem:[%s973_s17 + $0x88] sm:$0xff] %v410_v27  ;;  %v415_v37 = vmul.f32 0.5, %v351_v29  ;;  %v641_v38 = vclamps-f32 %v161_v18, 1.0  ;;  %v642_v39 = vclamps-f32 %v162_v19, 1.0 }
  0x4a   : > { %475 = vst [vmem:[%s973_s17 + $0x90] sm:$0xff] %v411_v28  ;;  %v643_v40 = vclamps-f32 %v163_v24, 1.0  ;;  %v168_v41 = vld [vmem:[%s950_s30 + $0xf8] sm:$0xff]  ;;  %476 = vst [vmem:[%s973_s17 + $0x98] sm:$0xff] %v412_v32  ;;  %v416_v42 = vmul.f32 0.5, %v352_v35  ;;  %v644_v43 = vclamps-f32 %v164_v25, 1.0 }
  0x4b   : > { %477 = vst [vmem:[%s973_s17 + $0xa0] sm:$0xff] %v413_v33  ;;  %478 = vst [vmem:[%s973_s17 + $0xa8] sm:$0xff] %v414_v34  ;;  %v645_v44 = vclamps-f32 %v165_v30, 1.0  ;;  %v646_v45 = vclamps-f32 %v166_v31, 1.0  ;;  %v353_v46 = vadd.f32 1.0, %v641_v38  ;;  %v354_v47 = vadd.f32 1.0, %v642_v39 }
  0x4c   : > { %479 = vst [vmem:[%s973_s17 + $0xb0] sm:$0xff] %v415_v37  ;;  %v355_v48 = vadd.f32 1.0, %v643_v40  ;;  %v647_v49 = vclamps-f32 %v167_v36, 1.0  ;;  %v169_v50 = vld [vmem:[%s950_s30 + $0x100] sm:$0xff]  ;;  %v170_v51 = vld [vmem:[%s950_s30 + $0x108] sm:$0xff]  ;;  %480 = vst [vmem:[%s973_s17 + $0xb8] sm:$0xff] %v416_v42 }
  0x4d   : > { %v356_v52 = vadd.f32 1.0, %v644_v43  ;;  %v357_v53 = vadd.f32 1.0, %v645_v44  ;;  %v358_v54 = vadd.f32 1.0, %v646_v45  ;;  %v648_v55 = vclamps-f32 %v168_v41, 1.0  ;;  %v171_v56 = vld [vmem:[%s950_s30 + $0x110] sm:$0xff]  ;;  %v172_v57 = vld [vmem:[%s950_s30 + $0x118] sm:$0xff] }
  0x4e   : > { %v417_v58 = vmul.f32 0.5, %v353_v46  ;;  %v418_v59 = vmul.f32 0.5, %v354_v47  ;;  %v419_v60 = vmul.f32 0.5, %v355_v48  ;;  %v359_v61 = vadd.f32 1.0, %v647_v49  ;;  %v173_v62 = vld [vmem:[%s950_s30 + $0x120] sm:$0xff]  ;;  %v174_v63 = vld [vmem:[%s950_s30 + $0x128] sm:$0xff] }
  0x4f   : > { %v420_v0 = vmul.f32 0.5, %v356_v52  ;;  %v421_v1 = vmul.f32 0.5, %v357_v53  ;;  %v422_v2 = vmul.f32 0.5, %v358_v54  ;;  %v360_v3 = vadd.f32 1.0, %v648_v55  ;;  %v175_v4 = vld [vmem:[%s950_s30 + $0x130] sm:$0xff]  ;;  %v176_v9 = vld [vmem:[%s950_s30 + $0x138] sm:$0xff] }
  0x50   : > { %481 = vst [vmem:[%s973_s17 + $0xc0] sm:$0xff] %v417_v58  ;;  %482 = vst [vmem:[%s973_s17 + $0xc8] sm:$0xff] %v418_v59  ;;  %v423_v5 = vmul.f32 0.5, %v359_v61  ;;  %v649_v6 = vclamps-f32 %v169_v50, 1.0  ;;  %v650_v7 = vclamps-f32 %v170_v51, 1.0  ;;  %v651_v8 = vclamps-f32 %v171_v56, 1.0 }
  0x51   : > { %483 = vst [vmem:[%s973_s17 + $0xd0] sm:$0xff] %v419_v60  ;;  %484 = vst [vmem:[%s973_s17 + $0xd8] sm:$0xff] %v420_v0  ;;  %v424_v10 = vmul.f32 0.5, %v360_v3  ;;  %v652_v11 = vclamps-f32 %v172_v57, 1.0  ;;  %v653_v12 = vclamps-f32 %v173_v62, 1.0  ;;  %v654_v13 = vclamps-f32 %v174_v63, 1.0 }
  0x52   : > { %485 = vst [vmem:[%s973_s17 + $0xe0] sm:$0xff] %v421_v1  ;;  %486 = vst [vmem:[%s973_s17 + $0xe8] sm:$0xff] %v422_v2  ;;  %v361_v14 = vadd.f32 1.0, %v649_v6  ;;  %v362_v15 = vadd.f32 1.0, %v650_v7  ;;  %v363_v16 = vadd.f32 1.0, %v651_v8  ;;  %v655_v17 = vclamps-f32 %v175_v4, 1.0 }
  0x53   : > { %487 = vst [vmem:[%s973_s17 + $0xf0] sm:$0xff] %v423_v5  ;;  %v177_v18 = vld [vmem:[%s950_s30 + $0x140] sm:$0xff]  ;;  %v178_v19 = vld [vmem:[%s950_s30 + $0x148] sm:$0xff]  ;;  %488 = vst [vmem:[%s973_s17 + $0xf8] sm:$0xff] %v424_v10  ;;  %v364_v20 = vadd.f32 1.0, %v652_v11  ;;  %v365_v21 = vadd.f32 1.0, %v653_v12 }
  0x54   : > { %v366_v22 = vadd.f32 1.0, %v654_v13  ;;  %v656_v23 = vclamps-f32 %v176_v9, 1.0  ;;  %v179_v24 = vld [vmem:[%s950_s30 + $0x150] sm:$0xff]  ;;  %v180_v25 = vld [vmem:[%s950_s30 + $0x158] sm:$0xff]  ;;  %v425_v26 = vmul.f32 0.5, %v361_v14  ;;  %v426_v27 = vmul.f32 0.5, %v362_v15 }
  0x55   : > { %v427_v28 = vmul.f32 0.5, %v363_v16  ;;  %v367_v29 = vadd.f32 1.0, %v655_v17  ;;  %v181_v30 = vld [vmem:[%s950_s30 + $0x160] sm:$0xff]  ;;  %v182_v31 = vld [vmem:[%s950_s30 + $0x168] sm:$0xff]  ;;  %v428_v32 = vmul.f32 0.5, %v364_v20  ;;  %v429_v33 = vmul.f32 0.5, %v365_v21 }
  0x56   : > { %v430_v34 = vmul.f32 0.5, %v366_v22  ;;  %v368_v35 = vadd.f32 1.0, %v656_v23  ;;  %v183_v36 = vld [vmem:[%s950_s30 + $0x170] sm:$0xff]  ;;  %489 = vst [vmem:[%s973_s17 + $0x100] sm:$0xff] %v425_v26  ;;  %490 = vst [vmem:[%s973_s17 + $0x108] sm:$0xff] %v426_v27  ;;  %v657_v38 = vclamps-f32 %v177_v18, 1.0 }
  0x57   : > { %491 = vst [vmem:[%s973_s17 + $0x110] sm:$0xff] %v427_v28  ;;  %v431_v37 = vmul.f32 0.5, %v367_v29  ;;  %v658_v39 = vclamps-f32 %v178_v19, 1.0  ;;  %v659_v40 = vclamps-f32 %v179_v24, 1.0  ;;  %v184_v41 = vld [vmem:[%s950_s30 + $0x178] sm:$0xff]  ;;  %492 = vst [vmem:[%s973_s17 + $0x118] sm:$0xff] %v428_v32 }
  0x58   : > { %493 = vst [vmem:[%s973_s17 + $0x120] sm:$0xff] %v429_v33  ;;  %494 = vst [vmem:[%s973_s17 + $0x128] sm:$0xff] %v430_v34  ;;  %v432_v42 = vmul.f32 0.5, %v368_v35  ;;  %v660_v43 = vclamps-f32 %v180_v25, 1.0  ;;  %v661_v44 = vclamps-f32 %v181_v30, 1.0  ;;  %v662_v45 = vclamps-f32 %v182_v31, 1.0 }
  0x59   : > { %495 = vst [vmem:[%s973_s17 + $0x130] sm:$0xff] %v431_v37  ;;  %v369_v46 = vadd.f32 1.0, %v657_v38  ;;  %v370_v47 = vadd.f32 1.0, %v658_v39  ;;  %v371_v48 = vadd.f32 1.0, %v659_v40  ;;  %v663_v49 = vclamps-f32 %v183_v36, 1.0  ;;  %v185_v50 = vld [vmem:[%s950_s30 + $0x180] sm:$0xff] }
  0x5a   : > { %v186_v51 = vld [vmem:[%s950_s30 + $0x188] sm:$0xff]  ;;  %496 = vst [vmem:[%s973_s17 + $0x138] sm:$0xff] %v432_v42  ;;  %v372_v52 = vadd.f32 1.0, %v660_v43  ;;  %v373_v53 = vadd.f32 1.0, %v661_v44  ;;  %v374_v54 = vadd.f32 1.0, %v662_v45  ;;  %v664_v55 = vclamps-f32 %v184_v41, 1.0 }
  0x5b   : > { %v187_v56 = vld [vmem:[%s950_s30 + $0x190] sm:$0xff]  ;;  %v188_v57 = vld [vmem:[%s950_s30 + $0x198] sm:$0xff]  ;;  %v433_v58 = vmul.f32 0.5, %v369_v46  ;;  %v434_v59 = vmul.f32 0.5, %v370_v47  ;;  %v435_v60 = vmul.f32 0.5, %v371_v48  ;;  %v375_v61 = vadd.f32 1.0, %v663_v49 }
  0x5c   : > { %v189_v62 = vld [vmem:[%s950_s30 + $0x1a0] sm:$0xff]  ;;  %v190_v63 = vld [vmem:[%s950_s30 + $0x1a8] sm:$0xff]  ;;  %v436_v0 = vmul.f32 0.5, %v372_v52  ;;  %v437_v1 = vmul.f32 0.5, %v373_v53  ;;  %v438_v2 = vmul.f32 0.5, %v374_v54  ;;  %v376_v3 = vadd.f32 1.0, %v664_v55 }
  0x5d   : > { %v191_v4 = vld [vmem:[%s950_s30 + $0x1b0] sm:$0xff]  ;;  %497 = vst [vmem:[%s973_s17 + $0x140] sm:$0xff] %v433_v58  ;;  %498 = vst [vmem:[%s973_s17 + $0x148] sm:$0xff] %v434_v59  ;;  %v439_v5 = vmul.f32 0.5, %v375_v61  ;;  %v665_v6 = vclamps-f32 %v185_v50, 1.0  ;;  %v666_v7 = vclamps-f32 %v186_v51, 1.0 }
  0x5e   : > { %499 = vst [vmem:[%s973_s17 + $0x150] sm:$0xff] %v435_v60  ;;  %v667_v8 = vclamps-f32 %v187_v56, 1.0  ;;  %v192_v9 = vld [vmem:[%s950_s30 + $0x1b8] sm:$0xff]  ;;  %500 = vst [vmem:[%s973_s17 + $0x158] sm:$0xff] %v436_v0  ;;  %v440_v10 = vmul.f32 0.5, %v376_v3  ;;  %v668_v11 = vclamps-f32 %v188_v57, 1.0 }
  0x5f   : > { %501 = vst [vmem:[%s973_s17 + $0x160] sm:$0xff] %v437_v1  ;;  %502 = vst [vmem:[%s973_s17 + $0x168] sm:$0xff] %v438_v2  ;;  %v669_v12 = vclamps-f32 %v189_v62, 1.0  ;;  %v670_v13 = vclamps-f32 %v190_v63, 1.0  ;;  %v377_v14 = vadd.f32 1.0, %v665_v6  ;;  %v378_v15 = vadd.f32 1.0, %v666_v7 }
  0x60   : > { %503 = vst [vmem:[%s973_s17 + $0x170] sm:$0xff] %v439_v5  ;;  %v379_v16 = vadd.f32 1.0, %v667_v8  ;;  %v671_v17 = vclamps-f32 %v191_v4, 1.0  ;;  %v193_v18 = vld [vmem:[%s950_s30 + $0x1c0] sm:$0xff]  ;;  %v194_v19 = vld [vmem:[%s950_s30 + $0x1c8] sm:$0xff]  ;;  %504 = vst [vmem:[%s973_s17 + $0x178] sm:$0xff] %v440_v10 }
  0x61   : > { %v380_v20 = vadd.f32 1.0, %v668_v11  ;;  %v381_v21 = vadd.f32 1.0, %v669_v12  ;;  %v382_v22 = vadd.f32 1.0, %v670_v13  ;;  %v672_v23 = vclamps-f32 %v192_v9, 1.0  ;;  %v195_v24 = vld [vmem:[%s950_s30 + $0x1d0] sm:$0xff]  ;;  %v196_v25 = vld [vmem:[%s950_s30 + $0x1d8] sm:$0xff] }
  0x62   : > { %v441_v26 = vmul.f32 0.5, %v377_v14  ;;  %v442_v27 = vmul.f32 0.5, %v378_v15  ;;  %v443_v28 = vmul.f32 0.5, %v379_v16  ;;  %v383_v29 = vadd.f32 1.0, %v671_v17  ;;  %v197_v30 = vld [vmem:[%s950_s30 + $0x1e0] sm:$0xff]  ;;  %v198_v31 = vld [vmem:[%s950_s30 + $0x1e8] sm:$0xff] }
  0x63   : > { %v444_v32 = vmul.f32 0.5, %v380_v20  ;;  %v445_v33 = vmul.f32 0.5, %v381_v21  ;;  %v446_v34 = vmul.f32 0.5, %v382_v22  ;;  %v384_v35 = vadd.f32 1.0, %v672_v23  ;;  %v199_v36 = vld [vmem:[%s950_s30 + $0x1f0] sm:$0xff]  ;;  %v200_v41 = vld [vmem:[%s950_s30 + $0x1f8] sm:$0xff] }
  0x64   : > { %505 = vst [vmem:[%s973_s17 + $0x180] sm:$0xff] %v441_v26  ;;  %506 = vst [vmem:[%s973_s17 + $0x188] sm:$0xff] %v442_v27  ;;  %v447_v37 = vmul.f32 0.5, %v383_v29  ;;  %v673_v38 = vclamps-f32 %v193_v18, 1.0  ;;  %v674_v39 = vclamps-f32 %v194_v19, 1.0  ;;  %v675_v40 = vclamps-f32 %v195_v24, 1.0 }
  0x65   : > { %507 = vst [vmem:[%s973_s17 + $0x190] sm:$0xff] %v443_v28  ;;  %508 = vst [vmem:[%s973_s17 + $0x198] sm:$0xff] %v444_v32  ;;  %v448_v42 = vmul.f32 0.5, %v384_v35  ;;  %v676_v43 = vclamps-f32 %v196_v25, 1.0  ;;  %v677_v44 = vclamps-f32 %v197_v30, 1.0  ;;  %v678_v45 = vclamps-f32 %v198_v31, 1.0 }
  0x66   : > { %509 = vst [vmem:[%s973_s17 + $0x1a0] sm:$0xff] %v445_v33  ;;  %510 = vst [vmem:[%s973_s17 + $0x1a8] sm:$0xff] %v446_v34  ;;  %v385_v46 = vadd.f32 1.0, %v673_v38  ;;  %v386_v47 = vadd.f32 1.0, %v674_v39  ;;  %v387_v48 = vadd.f32 1.0, %v675_v40  ;;  %v679_v49 = vclamps-f32 %v199_v36, 1.0 }
  0x67   : > { %511 = vst [vmem:[%s973_s17 + $0x1b0] sm:$0xff] %v447_v37  ;;  %512 = vst [vmem:[%s973_s17 + $0x1b8] sm:$0xff] %v448_v42  ;;  %v388_v50 = vadd.f32 1.0, %v676_v43  ;;  %v389_v51 = vadd.f32 1.0, %v677_v44  ;;  %v390_v52 = vadd.f32 1.0, %v678_v45  ;;  %v680_v53 = vclamps-f32 %v200_v41, 1.0 }
  0x68   : > { %v449_v54 = vmul.f32 0.5, %v385_v46  ;;  %v450_v55 = vmul.f32 0.5, %v386_v47  ;;  %v451_v56 = vmul.f32 0.5, %v387_v48  ;;  %v391_v57 = vadd.f32 1.0, %v679_v49  ;;  %s522_s2 = scalar_lea.sflag [#allocation4], %s944_s23  ;;  %s766_s3 = scalar_lea.vmem %s1090_s27, 8192 }
  0x69   : > { %v452_v58 = vmul.f32 0.5, %v388_v50  ;;  %v453_v59 = vmul.f32 0.5, %v389_v51  ;;  %v454_v60 = vmul.f32 0.5, %v390_v52  ;;  %v392_v61 = vadd.f32 1.0, %v680_v53  ;;  %p767_p10 = scmp.ne.s32.totalorder %s1090_s27, %s766_s3  ;;  %p1147_p11 = scmp.ne.s32.totalorder %s1143_s18, 0 }
  0x6a   : > { %513 = vst [vmem:[%s973_s17 + $0x1c0] sm:$0xff] %v449_v54  ;;  %514 = vst [vmem:[%s973_s17 + $0x1c8] sm:$0xff] %v450_v55  ;;  %v455_v62 = vmul.f32 0.5, %v391_v57  ;;  %s835_s4 = smov [#allocation5]  }
  0x6b   : > { %515 = vst [vmem:[%s973_s17 + $0x1d0] sm:$0xff] %v451_v56  ;;  %516 = vst [vmem:[%s973_s17 + $0x1d8] sm:$0xff] %v452_v58  ;;  %v456_v63 = vmul.f32 0.5, %v392_v61  ;;  %p768_p12 = pnand %p767_p10, %p1147_p11  ;;  %s770_s5 = sshll.u32 %s835_s4, 4  ;;  %s771_s5 = int_to_ptr.vmem [resolvable:$false] %s770_s5 }
  0x6c   : > { %517 = vst [vmem:[%s973_s17 + $0x1e0] sm:$0xff] %v453_v59  ;;  %518 = vst [vmem:[%s973_s17 + $0x1e8] sm:$0xff] %v454_v60  ;;  %s772_s11 = scalar_lea.vmem %s771_s5, 16384  ;;  %p773_p5 = scmp.lt.s32.totalorder %s1090_s27, %s771_s5 }
  0x6d   : > { %519 = vst [vmem:[%s973_s17 + $0x1f0] sm:$0xff] %v455_v62  ;;  %520 = vst [vmem:[%s973_s17 + $0x1f8] sm:$0xff] %v456_v63  ;;  %p769_p4 = pneg %p768_p12  ;;  %p774_p7 = scmp.lt.s32.totalorder %s772_s11, %s766_s3 }
  0x6f   : > { %p775_p8 = por %p774_p7, %p773_p5 }
  0x71   : > { %p776_p9 = pnand %p775_p8, %p769_p4 }
  0x73   : > { %779 = shalt.err (!%p776_p9)
}
  0x74   : > { %s780_s13 = scalar_lea.hbm %s1088_s29, 8192  ;;  %s784_s20 = scalar_lea.hbm %s1138_s1, 65536 }
  0x75   : > { %p781_p13 = scmp.ne.s32.totalorder %s1088_s29, %s780_s13  ;;  %p785_p2 = scmp.lt.s32.totalorder %s1088_s29, %s1138_s1 }
  0x76   : > { %p786_p3 = scmp.lt.s32.totalorder %s784_s20, %s780_s13 }
  0x77   : > { %p782_p1 = pnand %p781_p13, %p1147_p11 }
  0x78   : > { %p787_p6 = por %p786_p3, %p785_p2 }
  0x79   : > { %p783_p0 = pneg %p782_p1 }
  0x7b   : > { %p788_p10 = pnand %p787_p6, %p783_p0 }
  0x7d   : > { %791 = shalt.err (!%p788_p10)
}
  0x7e   : > { %s836_s24 = smov 128   ;;  %s837_s26 = smov 8  }
  0x7f   : > { %690 = dma.vmem_to_hbm [thread:$0]  (%p1147_p11), %s1090_s27, 8192, %s1088_s29, %s522_s2, %s836_s24, %s836_s24, %s837_s26  }
  0x80 PF: > { %p701_p12 = scmp.ge.s32.totalorder %s830_s9, 2  ;;  %s550_s30 = sand.u32 1, %s818_s6  }
  0x81   : > { %p1148_p4 = scmp.ne.s32.totalorder %s1144_s19, 0  ;;  %s551_s17 = scalar_lea.sflag [#allocation4], %s550_s30 }
  0x83   : > { %p697_p5 = pnand %p701_p12, %p1148_p4 }
  0x85   : > { %p698_p7 = pneg %p697_p5 }
  0x87   : > { %813 = dma.done.wait (%p698_p7), %s551_s17, 8192  }
  0x88   : > { %815 = vsyncadd (%p698_p7), %s551_s17, 4294959104  ;;  %p14_p8 = scmp.ge.s32.totalorder %s873_s12, 10   ;;  %s1149_s6 = smov %s822_s7 }
  0x89   : > { %s1150_s7 = smov %s826_s8  ;;  %s1151_s8 = smov %s885_s15 }
  0x8a   : > { %s1152_s9 = smov %s873_s12  ;;  %16 = sbr.rel (!%p14_p8) target bundleno = 5 (0x5), region = 69 }
  0x8f   :  { %556 = vsyncpa [#allocation3], 1 }
  0x90   :  { %558 = vsyncpa [#allocation3 + $0x1], 1 }
  0x91   :  { %559 = vsyncpa [#allocation4], 1 }
  0x92   :  { %561 = vsyncpa [#allocation4 + $0x1], 1 }

</bundles_post_ra>
